<compile_context>
chip_gen: v7x
topology: tpu7x:2x2x1
jax: 0.10.0
libtpu: 0.0.40
codegen_flags: <defaults>
</compile_context>

<pallas_src>
import numpy as np
import jax
import jax.numpy as jnp
from jax.experimental import pallas as pl
from jax.experimental.pallas import tpu as pltpu


# ------------------------------------------------- combined-matrix builder --

def _dft(n, sign):
    k = np.arange(n)
    return np.exp(sign * 2j * np.pi * np.outer(k, k) / n)


def _roll_perm(n, shift):
    """Matrix S with (S @ y)[i] = y[(i - shift) % n]  (== np.roll(y, shift))."""
    S = np.zeros((n, n), dtype=np.float64)
    S[np.arange(n), (np.arange(n) - shift) % n] = 1.0
    return S


def _reflect_pad_matrix(n, pad):
    """P (n+2*pad, n) with  P @ v == F.pad(v, (pad, pad), mode='reflect')."""
    n2 = n + 2 * pad
    P = np.zeros((n2, n), dtype=np.float64)
    for p in range(n2):
        r = p - pad
        if r < 0:
            r = -r
        elif r > n - 1:
            r = 2 * (n - 1) - r
        P[p, r] = 1.0
    return P


def _build_flc_matrices(H, W, transpose):
    """Fold pad / transpose / fft2 / fftshift / band-crop / ifftshift / ifft2 /
    real / CenterCrop (plus the Nyquist sample used by the 'high' branch)
    into small real matrices.  Returns (MLr, MLi, MRr, MRi, PL, PR) with
        Re(ML @ x @ MR)[:PL, :PR] == CenterCrop(low_part)   (transposed layout
                                                             when transpose=True)
        Re(ML @ x @ MR)[PL,  PR ] == fft2(pad(x), 'forward')[d2//2, d3//2]
    """
    ph, pw = 3 * H // 4, 3 * W // 4
    H2, W2 = H + 2 * ph, W + 2 * pw
    P_h = _reflect_pad_matrix(H, ph)          # (H2, H)
    P_w = _reflect_pad_matrix(W, pw)          # (W2, W)

    d2, d3 = (W2, H2) if transpose else (H2, W2)

    a2, b2 = int(d2 / 4), int(d2 / 4 * 3)
    a3, b3 = int(d3 / 4), int(d3 / 4 * 3)
    m2, m3 = b2 - a2, b3 - a3
    if d2 % 4 != 0 or d3 % 4 != 0:
        # TODO(synk): the reference module drops into (broken) try/except
        # fallback branches when the padded low band does not tile the
        # spectrum exactly; only the clean primary branch is implemented.
        raise NotImplementedError(
            "padded spatial sizes must be divisible by 4 (got %d, %d)" % (d2, d3))

    ch, cw = W // 2, H // 2                   # torchvision CenterCrop (h, w)
    assert ch <= m2 and cw <= m3
    ct2 = int(round((m2 - ch) / 2.0))
    ct3 = int(round((m3 - cw) / 2.0))

    D2, D3 = _dft(d2, -1.0), _dft(d3, -1.0)   # forward DFT (scaled below)
    E2, E3 = _dft(m2, +1.0), _dft(m3, +1.0)   # inverse DFT, norm='forward' -> unscaled
    S2, S3 = _roll_perm(d2, d2 // 2), _roll_perm(d3, d3 // 2)        # fftshift
    T2, T3 = _roll_perm(m2, -(m2 // 2)), _roll_perm(m3, -(m3 // 2))  # ifftshift
    C2, C3 = np.eye(d2)[a2:b2], np.eye(d3)[a3:b3]                    # band crop
    R2, R3 = np.eye(m2)[ct2:ct2 + ch], np.eye(m3)[ct3:ct3 + cw]      # CenterCrop

    A2 = R2 @ E2 @ T2 @ C2 @ S2 @ D2 / d2          # (ch, d2)
    A3 = D3 @ S3.T @ C3.T @ T3.T @ E3 @ R3.T / d3  # (d3, cw)

    if transpose:
        # low_crop = Re(A2 @ P_w @ x^T @ P_h^T @ A3); kernel computes the
        # transposed form Y = Re(ML @ x @ MR), low_crop == Y^T.
        ML = (P_h.T @ A3).T                    # (cw, H)
        MR = (A2 @ P_w).T                      # (W, ch)
    else:
        ML = A2 @ P_h                          # (ch, H)
        MR = P_w.T @ A3                        # (W, cw)
    PL, PR = ML.shape[0], MR.shape[1]

    # Nyquist sample of fft2(pad(x), norm='forward') as a bilinear form
    # g_h^T x g_w / (H2*W2)  (real because H2, W2 are even here).
    g_h = P_h.T @ ((-1.0) ** np.arange(H2))
    g_w = P_w.T @ ((-1.0) ** np.arange(W2))

    MLr = np.vstack([ML.real, (g_h / H2)[None, :]]).astype(np.float32)
    MLi = np.vstack([ML.imag, np.zeros((1, H))]).astype(np.float32)
    MRr = np.hstack([MR.real, (g_w / W2)[:, None]]).astype(np.float32)
    MRi = np.hstack([MR.imag, np.zeros((W, 1))]).astype(np.float32)
    return (jnp.asarray(MLr), jnp.asarray(MLi),
            jnp.asarray(MRr), jnp.asarray(MRi), PL, PR)


# ------------------------------------------------------------ Pallas kernel --

def _flc_fused_kernel(x_ref, mlr_ref, mli_ref, mrr_ref, mri_ref, o_ref):
    """o[b] = Re(ML @ x[b] @ MR) for every image in the (Bt, H, W) block."""
    bt, hh, ww = x_ref.shape
    pl1 = mlr_ref.shape[0]
    pr1 = mrr_ref.shape[1]
    cdt = x_ref.dtype

    # Right complex multiply: one lane/row-dense 2-D matmul over the whole
    # batch block (contraction W, rows Bt*H).
    x2 = x_ref[...].reshape(bt * hh, ww)
    tr = jnp.dot(x2, mrr_ref[...], preferred_element_type=jnp.float32)
    ti = jnp.dot(x2, mri_ref[...], preferred_element_type=jnp.float32)
    tr = tr.astype(cdt).reshape(bt, hh, pr1)
    ti = ti.astype(cdt).reshape(bt, hh, pr1)

    # Left complex multiply: batched matmul (flash-attention-style einsum).
    mlr = jnp.broadcast_to(mlr_ref[...][None], (bt, pl1, hh))
    mli = jnp.broadcast_to(mli_ref[...][None], (bt, pl1, hh))
    yr = jnp.einsum('bph,bhq->bpq', mlr, tr, preferred_element_type=jnp.float32)
    yi = jnp.einsum('bph,bhq->bpq', mli, ti, preferred_element_type=jnp.float32)
    o_ref[...] = (yr - yi).astype(o_ref.dtype)


def _fused_low_nyq(xb, MLr, MLi, MRr, MRi, block_b):
    B, H, W = xb.shape
    PL1, Hm = MLr.shape
    Wm, PR1 = MRr.shape

    Bpad = ((B + block_b - 1) // block_b) * block_b
    if Bpad != B:
        xb = jnp.pad(xb, ((0, Bpad - B), (0, 0), (0, 0)))

    return pl.pallas_call(
        _flc_fused_kernel,
        out_shape=jax.ShapeDtypeStruct((Bpad, PL1, PR1), jnp.float32),
        grid=(Bpad // block_b,),
        in_specs=[pl.BlockSpec((block_b, H, W), lambda b: (b, 0, 0)),
                  pl.BlockSpec((PL1, Hm), lambda b: (0, 0)),
                  pl.BlockSpec((PL1, Hm), lambda b: (0, 0)),
                  pl.BlockSpec((Wm, PR1), lambda b: (0, 0)),
                  pl.BlockSpec((Wm, PR1), lambda b: (0, 0))],
        out_specs=pl.BlockSpec((block_b, PL1, PR1), lambda b: (b, 0, 0)),
        compiler_params=pltpu.CompilerParams(
            dimension_semantics=("parallel",)),
    )(xb, MLr, MLi, MRr, MRi)[:B]


# ----------------------------------------------------------------- wrapper --

def _tv_center_crop(img, crop_h, crop_w):
    """torchvision.transforms.CenterCrop semantics on the last two dims."""
    h, w = img.shape[-2], img.shape[-1]
    if crop_w > w or crop_h > h:
        pad_l = (crop_w - w) // 2 if crop_w > w else 0
        pad_t = (crop_h - h) // 2 if crop_h > h else 0
        pad_r = (crop_w - w + 1) // 2 if crop_w > w else 0
        pad_b = (crop_h - h + 1) // 2 if crop_h > h else 0
        img = jnp.pad(img, [(0, 0)] * (img.ndim - 2) + [(pad_t, pad_b), (pad_l, pad_r)])
        h, w = img.shape[-2], img.shape[-1]
        if crop_w == w and crop_h == h:
            return img
    top = int(round((h - crop_h) / 2.0))
    left = int(round((w - crop_w) / 2.0))
    return img[..., top:top + crop_h, left:left + crop_w]


def flc_pooling_random_alpha(x, alpha, transpose=True, block_b=None,
                             use_bf16_mxu=False):
    x = x.astype(jnp.float32)
    N, C, H, W = x.shape
    MLr, MLi, MRr, MRi, PL, PR = _build_flc_matrices(H, W, transpose)
    PL1, PR1 = PL + 1, PR + 1

    B = N * C
    xb = x.reshape(B, H, W)
    if use_bf16_mxu:  # optional v6e/v7x fast path: bf16 MXU inputs, f32 accumulate
        xb = xb.astype(jnp.bfloat16)
        MLr, MLi = MLr.astype(jnp.bfloat16), MLi.astype(jnp.bfloat16)
        MRr, MRi = MRr.astype(jnp.bfloat16), MRi.astype(jnp.bfloat16)

    if block_b is None:
        # Double-buffered input+output blocks under a conservative ~8 MiB VMEM
        # budget (also fits v7x's 64 MiB physical / 32 MiB scoped VMEM).
        per_img_bytes = (H * W + PL1 * PR1) * 4
        block_b = max(1, min(B, (8 * 1024 * 1024) // (2 * per_img_bytes)))
    block_b = min(block_b, B)

    yext = _fused_low_nyq(xb, MLr, MLi, MRr, MRi, block_b)   # (B, PL1, PR1)

    low = yext[:, :PL, :PR].reshape(N, C, PL, PR)
    if transpose:
        low = jnp.swapaxes(low, -1, -2)                      # tiny output-sized op
    nyq = yext[:, PL, PR].reshape(N, C)

    # "high" branch of the reference: after its single-element spectral index,
    # it reduces to an ifft2 over the (N, C) axes (norm='forward'), the real
    # part, and a torchvision CenterCrop that zero-pads when (N, C) is smaller
    # than the crop.  This mixes data across the whole batch, so it stays as
    # O(N*C)-sized wrapper glue rather than being fused into the kernel.
    EN, EC = _dft(N, +1.0), _dft(C, +1.0)
    high_nc = (jnp.asarray(EN.real, jnp.float32) @ nyq @ jnp.asarray(EC.real, jnp.float32)
               - jnp.asarray(EN.imag, jnp.float32) @ nyq @ jnp.asarray(EC.imag, jnp.float32))
    high = _tv_center_crop(high_nc, W // 2, H // 2)          # (W//2, H//2), broadcast

    alpha = jnp.asarray(alpha, jnp.float32)
    return low * (1.0 - alpha) + high * alpha


def sample_alpha(key):
    # TODO(synk): the reference samples with np.random.choice (stateful global
    # numpy RNG) on every forward; here the same categorical draw uses an
    # explicit jax.random key.
    p = jnp.asarray([0.35, 0.15, 0.1, 0.06, 0.06, 0.06, 0.06, 0.06, 0.06, 0.04],
                    jnp.float32)
    return jax.random.choice(key, 10, p=p).astype(jnp.float32) / 10.0


# -------------------------------------------------------------------- main --

if __name__ == "__main__":
    key = jax.random.PRNGKey(0)
    kx, ka = jax.random.split(key)
    x = jax.random.normal(kx, (2, 4, 16, 16), dtype=jnp.float32)
    alpha = sample_alpha(ka)

    fwd = jax.jit(flc_pooling_random_alpha,
                  static_argnames=("transpose", "block_b", "use_bf16_mxu"))
    out = fwd(x, alpha)
    jax.block_until_ready(out)
    assert out.shape == (2, 4, 8, 8), out.shape
    assert bool(jnp.all(jnp.isfinite(out)))
    print("KERNEL_OK")
</pallas_src>

<mosaic_0001>
module attributes {stable_mosaic.version = 11 : i64} {
  func.func @_flc_fused_kernel(%arg0: i32, %arg1: memref<8x16x16xf32, #tpu.memory_space<vmem>>, %arg2: memref<9x16xf32, #tpu.memory_space<vmem>>, %arg3: memref<9x16xf32, #tpu.memory_space<vmem>>, %arg4: memref<16x9xf32, #tpu.memory_space<vmem>>, %arg5: memref<16x9xf32, #tpu.memory_space<vmem>>, %arg6: memref<8x9x9xf32, #tpu.memory_space<vmem>>) attributes {dimension_semantics = [#tpu.dimension_semantics<parallel>], iteration_bounds = array<i64: 1>, scalar_prefetch = 0 : i64, scratch_operands = 0 : i64, tpu.core_type = #tpu.core_type<tc>, window_params = [{transform_indices = @transform_0, window_bounds = array<i64: 8, 16, 16>}, {pipeline_mode = #tpu.pipeline_mode<synchronous>, transform_indices = @transform_1, window_bounds = array<i64: 9, 16>}, {pipeline_mode = #tpu.pipeline_mode<synchronous>, transform_indices = @transform_2, window_bounds = array<i64: 9, 16>}, {pipeline_mode = #tpu.pipeline_mode<synchronous>, transform_indices = @transform_3, window_bounds = array<i64: 16, 9>}, {pipeline_mode = #tpu.pipeline_mode<synchronous>, transform_indices = @transform_4, window_bounds = array<i64: 16, 9>}, {transform_indices = @transform_5, window_bounds = array<i64: 8, 9, 9>}]} {
    %c0 = arith.constant 0 : index
    %c0_0 = arith.constant 0 : index
    %c0_1 = arith.constant 0 : index
    %0 = vector.load %arg1[%c0, %c0_0, %c0_1] : memref<8x16x16xf32, #tpu.memory_space<vmem>>, vector<8x16x16xf32>
    %1 = vector.shape_cast %0 : vector<8x16x16xf32> to vector<128x16xf32>
    %c0_2 = arith.constant 0 : index
    %c0_3 = arith.constant 0 : index
    %2 = vector.load %arg4[%c0_2, %c0_3] : memref<16x9xf32, #tpu.memory_space<vmem>>, vector<16x9xf32>
    %cst = arith.constant dense<0.000000e+00> : vector<128x9xf32>
    %3 = tpu.matmul %1, %2, %cst {dimension_numbers = #tpu.dot_dimension_numbers<[1], [0], [0], [1], [0, 0, 1, 1], [], []>} : vector<128x16xf32>, vector<16x9xf32>, vector<128x9xf32> -> vector<128x9xf32>
    %c0_4 = arith.constant 0 : index
    %c0_5 = arith.constant 0 : index
    %4 = vector.load %arg5[%c0_4, %c0_5] : memref<16x9xf32, #tpu.memory_space<vmem>>, vector<16x9xf32>
    %cst_6 = arith.constant dense<0.000000e+00> : vector<128x9xf32>
    %5 = tpu.matmul %1, %4, %cst_6 {dimension_numbers = #tpu.dot_dimension_numbers<[1], [0], [0], [1], [0, 0, 1, 1], [], []>} : vector<128x16xf32>, vector<16x9xf32>, vector<128x9xf32> -> vector<128x9xf32>
    %6 = vector.shape_cast %3 : vector<128x9xf32> to vector<8x16x9xf32>
    %7 = vector.shape_cast %5 : vector<128x9xf32> to vector<8x16x9xf32>
    %c0_7 = arith.constant 0 : index
    %c0_8 = arith.constant 0 : index
    %8 = vector.load %arg2[%c0_7, %c0_8] : memref<9x16xf32, #tpu.memory_space<vmem>>, vector<9x16xf32>
    %9 = vector.shape_cast %8 : vector<9x16xf32> to vector<1x9x16xf32>
    %10 = vector.shape_cast %9 : vector<1x9x16xf32> to vector<1x9x16xf32>
    %11 = vector.broadcast %10 : vector<1x9x16xf32> to vector<8x9x16xf32>
    %c0_9 = arith.constant 0 : index
    %c0_10 = arith.constant 0 : index
    %12 = vector.load %arg3[%c0_9, %c0_10] : memref<9x16xf32, #tpu.memory_space<vmem>>, vector<9x16xf32>
    %13 = vector.shape_cast %12 : vector<9x16xf32> to vector<1x9x16xf32>
    %14 = vector.shape_cast %13 : vector<1x9x16xf32> to vector<1x9x16xf32>
    %15 = vector.broadcast %14 : vector<1x9x16xf32> to vector<8x9x16xf32>
    "tpu.trace_start"() <{level = 10 : i32, message = "bph,bhq->bpq"}> : () -> ()
    %cst_11 = arith.constant dense<0.000000e+00> : vector<8x9x9xf32>
    %16 = tpu.matmul %11, %6, %cst_11 {dimension_numbers = #tpu.dot_dimension_numbers<[2], [1], [1], [2], [0, 0, 0, 1, 1, 2], [0], [0]>} : vector<8x9x16xf32>, vector<8x16x9xf32>, vector<8x9x9xf32> -> vector<8x9x9xf32>
    %cst_12 = arith.constant dense<0.000000e+00> : vector<8x9x9xf32>
    %17 = tpu.matmul %15, %7, %cst_12 {dimension_numbers = #tpu.dot_dimension_numbers<[2], [1], [1], [2], [0, 0, 0, 1, 1, 2], [0], [0]>} : vector<8x9x16xf32>, vector<8x16x9xf32>, vector<8x9x9xf32> -> vector<8x9x9xf32>
    "tpu.trace_stop"() : () -> ()
    %18 = arith.subf %16, %17 : vector<8x9x9xf32>
    %c0_13 = arith.constant 0 : index
    %c0_14 = arith.constant 0 : index
    %c0_15 = arith.constant 0 : index
    %19 = vector.load %arg6[%c0_13, %c0_14, %c0_15] : memref<8x9x9xf32, #tpu.memory_space<vmem>>, vector<8x9x9xf32>
    tpu.vector_store %arg6[%c0_13, %c0_14, %c0_15], %18 {strides = array<i32>} : memref<8x9x9xf32, #tpu.memory_space<vmem>>, vector<8x9x9xf32>,
    return
  }
  func.func @transform_0(%arg0: i32) -> (i32, i32, i32) {
    %c0_i32 = arith.constant 0 : i32
    %c0_i32_0 = arith.constant 0 : i32
    %c0_i32_1 = arith.constant 0 : i32
    return %arg0, %c0_i32, %c0_i32_0 : i32, i32, i32
  }
  func.func @transform_1(%arg0: i32) -> (i32, i32) {
    %c0_i32 = arith.constant 0 : i32
    %c0_i32_0 = arith.constant 0 : i32
    %c0_i32_1 = arith.constant 0 : i32
    return %c0_i32, %c0_i32_0 : i32, i32
  }
  func.func @transform_2(%arg0: i32) -> (i32, i32) {
    %c0_i32 = arith.constant 0 : i32
    %c0_i32_0 = arith.constant 0 : i32
    %c0_i32_1 = arith.constant 0 : i32
    return %c0_i32, %c0_i32_0 : i32, i32
  }
  func.func @transform_3(%arg0: i32) -> (i32, i32) {
    %c0_i32 = arith.constant 0 : i32
    %c0_i32_0 = arith.constant 0 : i32
    %c0_i32_1 = arith.constant 0 : i32
    return %c0_i32, %c0_i32_0 : i32, i32
  }
  func.func @transform_4(%arg0: i32) -> (i32, i32) {
    %c0_i32 = arith.constant 0 : i32
    %c0_i32_0 = arith.constant 0 : i32
    %c0_i32_1 = arith.constant 0 : i32
    return %c0_i32, %c0_i32_0 : i32, i32
  }
  func.func @transform_5(%arg0: i32) -> (i32, i32, i32) {
    %c0_i32 = arith.constant 0 : i32
    %c0_i32_0 = arith.constant 0 : i32
    %c0_i32_1 = arith.constant 0 : i32
    return %arg0, %c0_i32, %c0_i32_0 : i32, i32, i32
  }
}

</mosaic_0001>

<bundles_post_ra>
// kernel: squeeze.1
= control target key start
LH: loop header
LB: loop body
LE: loop exit
PB: predicated region body
PF: predicated region fallthrough
CT: control target
= control target key end

     0   :  { %vm19_vm0 = vcmask 31744   ;;  %v38_v6 = vmov 0.0   ;;  %s55_s0 = inlined_call_operand.vmem [shape: bf16[8], index: 0, kind: input, shape index: {}]   ;;  %s56_s1 = inlined_call_operand.vmem [shape: bf16[2,4], index: 1, kind: output, shape index: {}]  }
   0x1   :  { %v14_v0 = vld [vmem:[%s55_s0] sm:$0x1]  ;;  %s37_s0 = smov 124  }
   0x2   :  { %v15_v1 = vunpack.c.l.bf16 %v14_v0 }
   0x4   :  { %17 = vst [vmem:[#allocation1] sm:$0x3] %v15_v1 }
   0xb   :  { %v21_v2 = vld [vmem:[#allocation1] sm:$0x1]  }
   0xc   :  { %v18_v3 = vld [vmem:[#allocation1] sm:$0x1]   ;;  %22 = vrot.lane.b32.xlu0 %v21_v2, %s37_s0 }
   0xd   :  { %20 = vst.msk [vmem:[#allocation0] sm:$0x1] %vm19_vm0, %v18_v3  }
  0x7e   :  { %v23_v4 = vpop.permute.xlu0 %22  }
  0x7f   :  { %26 = vst.msk [vmem:[#allocation0 + $0x1] sm:$0x1] %vm19_vm0, %v23_v4  }
  0x86   :  { %v31_v5 = vld [vmem:[#allocation0] sm:$0x3] }
  0x87   :  { %v32_v7 = vpack.c.bf16 %v38_v6, %v31_v5 }
  0x89   :  { %34 = vst [vmem:[%s56_s1] sm:$0x1] %v32_v7 }

// kernel: flc_pooling_random_alpha.1
= control target key start
LH: loop header
LB: loop body
LE: loop exit
PB: predicated region body
PF: predicated region fallthrough
CT: control target
= control target key end

     0   :  { %10 = vsyncpa [#allocation3], 0  ;;  %s2410_s0 = inlined_call_operand.hbm [shape: f32[8,16,16], index: 0, kind: input, shape index: {}]   ;;  %s2411_s1 = inlined_call_operand.hbm [shape: f32[9,16], index: 1, kind: input, shape index: {}]   ;;  %s2412_s2 = inlined_call_operand.hbm [shape: f32[9,16], index: 2, kind: input, shape index: {}]   ;;  %s2413_s3 = inlined_call_operand.vmem [shape: f32[16,9], index: 3, kind: input, shape index: {}]   ;;  %s2414_s4 = inlined_call_operand.vmem [shape: f32[16,9], index: 4, kind: input, shape index: {}]   ;;  %s2415_s5 = inlined_call_operand.vmem [shape: f32[8,9,9], index: 5, kind: output, shape index: {}]  }
   0x1   :  { %11 = vsyncpa [#allocation5], 0  ;;  %s2155_s18 = smov [#allocation4]   ;;  %s2156_s20 = smov [#allocation2]  }
   0x2   :  { %s29_s19 = sshll.u32 %s2155_s18, 4  ;;  %s17_s21 = sshll.u32 %s2156_s20, 4  ;;  %s30_s19 = int_to_ptr.vmem [resolvable:$true] %s29_s19  ;;  %s2190_s21 = int_to_ptr.vmem [resolvable:$true] %s17_s21 }
   0x3   :  { %s2085_s24 = scalar_lea.hbm %s2411_s1, 256 }
   0x4   :  { %p2086_p0 = scmp.ne.s32.totalorder %s2411_s1, %s2085_s24  ;;  %p2089_p1 = scmp.lt.u32.totalorder %s2085_s24, %s2411_s1 }
   0x6   :  { %p2091_p2 = pnand %p2089_p1, %p2086_p0 }
   0x8   :  { %2094 = shalt.err (!%p2091_p2)
}
   0x9   :  { %s2095_s29 = scalar_lea.vmem %s30_s19, 256  ;;  %p2100_p4 = scmp.lt.s32.totalorder %s30_s19, %s30_s19 }
   0xa   :  { %p2096_p3 = scmp.ne.s32.totalorder %s30_s19, %s2095_s29  ;;  %p2101_p5 = scmp.lt.s32.totalorder %s2095_s29, %s2095_s29 }
   0xc   :  { %p2102_p6 = por %p2101_p5, %p2100_p4 }
   0xe   :  { %p2103_p7 = pnand %p2102_p6, %p2096_p3 }
  0x10   :  { %2106 = shalt.err (!%p2103_p7)
}
  0x11   :  { %s2157_s30 = smov 128   ;;  %s2158_s6 = smov 8  }
  0x12   :  { %35 = dma.hbm_to_vmem [thread:$0]  %s2411_s1, 256, %s30_s19, [#allocation5], %s2157_s30, %s2157_s30, %s2158_s6  }
  0x13   :  { %s2107_s11 = scalar_lea.hbm %s2410_s0, 2048 }
  0x14   :  { %p2108_p8 = scmp.ne.s32.totalorder %s2410_s0, %s2107_s11  ;;  %p2111_p9 = scmp.lt.u32.totalorder %s2107_s11, %s2410_s0 }
  0x16   :  { %p2113_p10 = pnand %p2111_p9, %p2108_p8 }
  0x18   :  { %2116 = shalt.err (!%p2113_p10)
}
  0x19   :  { %s2117_s16 = scalar_lea.vmem %s2190_s21, 2048  ;;  %p2122_p12 = scmp.lt.s32.totalorder %s2190_s21, %s2190_s21 }
  0x1a   :  { %p2118_p11 = scmp.ne.s32.totalorder %s2190_s21, %s2117_s16  ;;  %p2123_p13 = scmp.lt.s32.totalorder %s2117_s16, %s2117_s16 }
  0x1c   :  { %p2124_p0 = por %p2123_p13, %p2122_p12 }
  0x1e   :  { %p2125_p1 = pnand %p2124_p0, %p2118_p11 }
  0x20   :  { %2128 = shalt.err (!%p2125_p1)
}
  0x21   :  { %23 = dma.hbm_to_vmem [thread:$0]  %s2410_s0, 2048, %s2190_s21, [#allocation3], %s2157_s30, %s2157_s30, %s2158_s6  }
  0x22   :  { %s2159_s18 = smov [#allocation6]   ;;  %s2129_s23 = scalar_lea.hbm %s2412_s2, 256 }
  0x23   :  { %s41_s19 = sshll.u32 %s2159_s18, 4  ;;  %p2130_p2 = scmp.ne.s32.totalorder %s2412_s2, %s2129_s23  ;;  %s42_s19 = int_to_ptr.vmem [resolvable:$true] %s41_s19 }
  0x24   :  { %p2133_p3 = scmp.lt.u32.totalorder %s2129_s23, %s2412_s2 }
  0x26   :  { %p2135_p4 = pnand %p2133_p3, %p2130_p2 }
  0x28   :  { %2138 = shalt.err (!%p2135_p4)
}
  0x29   :  { %s2139_s28 = scalar_lea.vmem %s42_s19, 256  ;;  %p2144_p6 = scmp.lt.s32.totalorder %s42_s19, %s42_s19 }
  0x2a   :  { %p2140_p5 = scmp.ne.s32.totalorder %s42_s19, %s2139_s28  ;;  %p2145_p7 = scmp.lt.s32.totalorder %s2139_s28, %s2139_s28 }
  0x2c   :  { %p2146_p8 = por %p2145_p7, %p2144_p6 }
  0x2e   :  { %p2147_p9 = pnand %p2146_p8, %p2140_p5 }
  0x30   :  { %2150 = shalt.err (!%p2147_p9)
}
  0x31   :  { %47 = dma.hbm_to_vmem [thread:$0]  %s2412_s2, 256, %s42_s19, [#allocation5], %s2157_s30, %s2157_s30, %s2158_s6  }
  0x32   :  { %2151 = dma.done.wait [#allocation3], 2048  }
  0x33   :  { %2152 = vsyncadd [#allocation3], 4294965248 }
  0x34   :  { %2153 = dma.done.wait [#allocation5], 512  }
  0x35   :  { %2154 = vsyncadd [#allocation5], 4294966784  ;;  %vm79_vm0 = vcmask 130048   ;;  %v77_v0 = vld [vmem:[%s2413_s3] sm:$0xff]  ;;  %v78_v1 = vld [vmem:[%s2413_s3 + $0x8] sm:$0xff]  ;;  %vm1654_vm1 = vcmask 65536  }
  0x36   :  { %v61_v2 = vld [vmem:[#allocation2] sm:$0xff]  ;;  %v2008_v3 = vpack.c.bf16 %v78_v1, %v77_v0  ;;  %v274_v5 = vld [vmem:[%s2414_s4 + $0x8] sm:$0xff]  ;;  %v63_v8 = vld [vmem:[#allocation2 + $0x10] sm:$0xff]  ;;  %vm1652_vm2 = vcmask 72704  }
  0x37   :  { %1844 = vmatprep.mubr.msk.f32.mxu0 %vm79_vm0, %v61_v2  ;;  %1872 = vmatprep.mubr.msk.f32.mxu1 %vm79_vm0, %v61_v2  ;;  %v273_v4 = vld [vmem:[%s2414_s4] sm:$0xff]  ;;  %v62_v6 = vld [vmem:[#allocation2 + $0x8] sm:$0xff]  ;;  %v64_v9 = vld [vmem:[#allocation2 + $0x18] sm:$0xff] }
  0x38   :  { %2009 = vmatprep.subr.bf16.mxu0 %v2008_v3  ;;  %v2012_v7 = vpack.c.bf16 %v274_v5, %v273_v4  ;;  %v65_v10 = vld [vmem:[#allocation2 + $0x20] sm:$0xff]  ;;  %v66_v11 = vld [vmem:[#allocation2 + $0x28] sm:$0xff]  ;;  %v67_v12 = vld [vmem:[#allocation2 + $0x30] sm:$0xff] }
  0x39   :  { %2011 = vmatpush3.bf16.msra.mxu0 %v2008_v3  ;;  %v68_v13 = vld [vmem:[#allocation2 + $0x38] sm:$0xff]  ;;  %v69_v14 = vld [vmem:[#allocation2 + $0x40] sm:$0xff]  ;;  %v70_v15 = vld [vmem:[#allocation2 + $0x48] sm:$0xff] }
  0x3a   :  { %2013 = vmatprep.subr.bf16.mxu1 %v2012_v7  ;;  %v71_v16 = vld [vmem:[#allocation2 + $0x50] sm:$0xff]  ;;  %v72_v17 = vld [vmem:[#allocation2 + $0x58] sm:$0xff]  ;;  %v73_v18 = vld [vmem:[#allocation2 + $0x60] sm:$0xff] }
  0x3b   :  { %2015 = vmatpush3.bf16.msra.mxu1 %v2012_v7  ;;  %v74_v19 = vld [vmem:[#allocation2 + $0x68] sm:$0xff]  ;;  %v75_v20 = vld [vmem:[#allocation2 + $0x70] sm:$0xff]  ;;  %v76_v21 = vld [vmem:[#allocation2 + $0x78] sm:$0xff] }
  0x3c   :  { %1845 = vmatmul.mubr.msk.f32.vlgmr.msra.gmra.mrb[0].mxu0 %vm79_vm0, %v62_v6  ;;  %v2286_v22 = vld [vmem:[#allocation4] sm:$0xff]  ;;  %v2292_v30 = vld [vmem:[#allocation4 + $0x8] sm:$0x1]  ;;  %v422_v5 = vld [vmem:[#allocation6] sm:$0xff] }
  0x3d   :  { %1847 = vmatprep.mubr.msk.f32.mxu0 %vm79_vm0, %v63_v8 }
  0x3e   :  { %1873 = vmatmul.mubr.msk.f32.vlgmr.msra.gmra.mrb[0].mxu1 %vm79_vm0, %v62_v6 }
  0x3f   :  { %1875 = vmatprep.mubr.msk.f32.mxu1 %vm79_vm0, %v63_v8  ;;  %v423_v8 = vld [vmem:[#allocation6 + $0x8] sm:$0x1] }
  0x40   :  { %1848 = vmatmul.mubr.msk.f32.gmra.mrb[2].mxu0 %vm79_vm0, %v64_v9 }
  0x41   :  { %1850 = vmatprep.mubr.msk.f32.mxu0 %vm79_vm0, %v65_v10 }
  0x42   :  { %1876 = vmatmul.mubr.msk.f32.gmra.mrb[2].mxu1 %vm79_vm0, %v64_v9 }
  0x43   :  { %1878 = vmatprep.mubr.msk.f32.mxu1 %vm79_vm0, %v65_v10 }
  0x44   :  { %1851 = vmatmul.mubr.msk.f32.gmra.mrb[4].mxu0 %vm79_vm0, %v66_v11 }
  0x45   :  { %1853 = vmatprep.mubr.msk.f32.mxu0 %vm79_vm0, %v67_v12 }
  0x46   :  { %1879 = vmatmul.mubr.msk.f32.gmra.mrb[4].mxu1 %vm79_vm0, %v66_v11 }
  0x47   :  { %1881 = vmatprep.mubr.msk.f32.mxu1 %vm79_vm0, %v67_v12 }
  0x48   :  { %1854 = vmatmul.mubr.msk.f32.gmra.mrb[6].mxu0 %vm79_vm0, %v68_v13 }
  0x49   :  { %1856 = vmatprep.mubr.msk.f32.mxu0 %vm79_vm0, %v69_v14 }
  0x4a   :  { %1882 = vmatmul.mubr.msk.f32.gmra.mrb[6].mxu1 %vm79_vm0, %v68_v13 }
  0x4b   :  { %1884 = vmatprep.mubr.msk.f32.mxu1 %vm79_vm0, %v69_v14 }
  0x4c   :  { %1857 = vmatmul.mubr.msk.f32.gmra.mrb[8].mxu0 %vm79_vm0, %v70_v15 }
  0x4d   :  { %1859 = vmatprep.mubr.msk.f32.mxu0 %vm79_vm0, %v71_v16 }
  0x4e   :  { %1885 = vmatmul.mubr.msk.f32.gmra.mrb[8].mxu1 %vm79_vm0, %v70_v15 }
  0x4f   :  { %1887 = vmatprep.mubr.msk.f32.mxu1 %vm79_vm0, %v71_v16 }
  0x50   :  { %1860 = vmatmul.mubr.msk.f32.gmra.mrb[10].mxu0 %vm79_vm0, %v72_v17 }
  0x51   :  { %1862 = vmatprep.mubr.msk.f32.mxu0 %vm79_vm0, %v73_v18 }
  0x52   :  { %1888 = vmatmul.mubr.msk.f32.gmra.mrb[10].mxu1 %vm79_vm0, %v72_v17 }
  0x53   :  { %1890 = vmatprep.mubr.msk.f32.mxu1 %vm79_vm0, %v73_v18 }
  0x54   :  { %1863 = vmatmul.mubr.msk.f32.gmra.mrb[12].mxu0 %vm79_vm0, %v74_v19 }
  0x55   :  { %1865 = vmatprep.mubr.msk.f32.mxu0 %vm79_vm0, %v75_v20 }
  0x56   :  { %1891 = vmatmul.mubr.msk.f32.gmra.mrb[12].mxu1 %vm79_vm0, %v74_v19 }
  0x57   :  { %1893 = vmatprep.mubr.msk.f32.mxu1 %vm79_vm0, %v75_v20 }
  0x58   :  { %1866 = vmatmul.mubr.msk.f32.gmra.mrb[14].mxu0 %vm79_vm0, %v76_v21 }
  0x59   :  { %1900 = vmatprep.mubr.msk.f32.mxu0 %vm79_vm0, %v2286_v22 }
  0x5a   :  { %1894 = vmatmul.mubr.msk.f32.gmra.mrb[14].mxu1 %vm79_vm0, %v76_v21 }
  0x5b   :  { %1907 = vmatprep.mubr.msk.f32.mxu1 %vm79_vm0, %v2286_v22 }
 0x10f   :  { %v1846_v23 = vpop.f32.mrb[0].mxu0 }
 0x110   :  { %v194_v24 = vpop.f32.mrb[1].mxu0 }
 0x111   :  { %v2016_v25 = vpack.c.bf16 %v1846_v23, %v194_v24  ;;  %v1874_v26 = vpop.f32.mrb[0].mxu1 }
 0x112   :  { %v341_v28 = vpop.f32.mrb[1].mxu1 }
 0x113   :  { %v1849_v27 = vpop.f32.mrb[2].mxu0  ;;  %2017 = vmatprep.subr.bf16.mxu0 %v2016_v25  ;;  %v2294_v31 = vpack.c.bf16 %v1874_v26, %v341_v28 }
 0x114   :  { %v204_v29 = vpop.f32.mrb[3].mxu0  ;;  %2019 = vmatpush3.bf16.msra.mxu0 %v2016_v25 }
 0x115   :  { %v2020_v32 = vpack.c.bf16 %v1849_v27, %v204_v29  ;;  %v1877_v33 = vpop.f32.mrb[2].mxu1 }
 0x116   :  { %v351_v35 = vpop.f32.mrb[3].mxu1 }
 0x117   :  { %2021 = vmatprep.subr.bf16.mxu1 %v2020_v32  ;;  %v1852_v34 = vpop.f32.mrb[4].mxu0  ;;  %1901 = vmatmul.mubr.msk.f32.vlgmr.msra.gmra.mrb[16].mxu0 %vm79_vm0, %v2292_v30  ;;  %v2300_v37 = vpack.c.bf16 %v1877_v33, %v351_v35 }
 0x118   :  { %2023 = vmatpush3.bf16.msra.mxu1 %v2020_v32  ;;  %v214_v36 = vpop.f32.mrb[5].mxu0  ;;  %1914 = vmatprep.mubr.msk.f32.mxu0 %vm79_vm0, %v2286_v22 }
 0x119   :  { %v2024_v38 = vpack.c.bf16 %v1852_v34, %v214_v36  ;;  %v1880_v39 = vpop.f32.mrb[4].mxu1 }
 0x11a   :  { %v361_v41 = vpop.f32.mrb[5].mxu1 }
 0x11b   :  { %v1855_v40 = vpop.f32.mrb[6].mxu0  ;;  %2025 = vmatprep.subr.bf16.mxu0 %v2024_v38  ;;  %1908 = vmatmul.mubr.msk.f32.vlgmr.msra.gmra.mrb[16].mxu1 %vm79_vm0, %v2292_v30  ;;  %v2056_v43 = vpack.c.bf16 %v1880_v39, %v361_v41 }
 0x11c   :  { %v224_v42 = vpop.f32.mrb[7].mxu0  ;;  %2027 = vmatpush3.bf16.msra.mxu0 %v2024_v38  ;;  %1921 = vmatprep.mubr.msk.f32.mxu1 %vm79_vm0, %v2286_v22 }
 0x11d   :  { %v2028_v44 = vpack.c.bf16 %v1855_v40, %v224_v42  ;;  %v1883_v45 = vpop.f32.mrb[6].mxu1 }
 0x11e   :  { %v371_v47 = vpop.f32.mrb[7].mxu1 }
 0x11f   :  { %v1858_v46 = vpop.f32.mrb[8].mxu0  ;;  %2029 = vmatprep.subr.bf16.mxu1 %v2028_v44  ;;  %1915 = vmatmul.mubr.msk.f32.vlgmr.msra.gmra.mrb[18].mxu0 %vm79_vm0, %v2292_v30  ;;  %v2060_v49 = vpack.c.bf16 %v1883_v45, %v371_v47 }
 0x120   :  { %v234_v48 = vpop.f32.mrb[9].mxu0  ;;  %2031 = vmatpush3.bf16.msra.mxu1 %v2028_v44  ;;  %1928 = vmatprep.mubr.msk.f32.mxu0 %vm79_vm0, %v2286_v22 }
 0x121   :  { %v2032_v50 = vpack.c.bf16 %v1858_v46, %v234_v48  ;;  %v1886_v51 = vpop.f32.mrb[8].mxu1 }
 0x122   :  { %v381_v53 = vpop.f32.mrb[9].mxu1 }
 0x123   :  { %v1861_v52 = vpop.f32.mrb[10].mxu0  ;;  %2033 = vmatprep.subr.bf16.mxu0 %v2032_v50  ;;  %1922 = vmatmul.mubr.msk.f32.vlgmr.msra.gmra.mrb[18].mxu1 %vm79_vm0, %v2292_v30  ;;  %v2064_v55 = vpack.c.bf16 %v1886_v51, %v381_v53 }
 0x124   :  { %v244_v54 = vpop.f32.mrb[11].mxu0  ;;  %2035 = vmatpush3.bf16.msra.mxu0 %v2032_v50  ;;  %1935 = vmatprep.mubr.msk.f32.mxu1 %vm79_vm0, %v2286_v22 }
 0x125   :  { %v2036_v56 = vpack.c.bf16 %v1861_v52, %v244_v54  ;;  %v1889_v57 = vpop.f32.mrb[10].mxu1 }
 0x126   :  { %v391_v59 = vpop.f32.mrb[11].mxu1 }
 0x127   :  { %v1864_v58 = vpop.f32.mrb[12].mxu0  ;;  %2037 = vmatprep.subr.bf16.mxu1 %v2036_v56  ;;  %1929 = vmatmul.mubr.msk.f32.vlgmr.msra.gmra.mrb[20].mxu0 %vm79_vm0, %v2292_v30  ;;  %v2068_v61 = vpack.c.bf16 %v1889_v57, %v391_v59 }
 0x128   :  { %v254_v60 = vpop.f32.mrb[13].mxu0  ;;  %2039 = vmatpush3.bf16.msra.mxu1 %v2036_v56  ;;  %1942 = vmatprep.mubr.msk.f32.mxu0 %vm79_vm0, %v2286_v22 }
 0x129   :  { %v2040_v62 = vpack.c.bf16 %v1864_v58, %v254_v60  ;;  %v1892_v63 = vpop.f32.mrb[12].mxu1 }
 0x12a   :  { %v401_v1 = vpop.f32.mrb[13].mxu1 }
 0x12b   :  { %v1867_v0 = vpop.f32.mrb[14].mxu0  ;;  %2041 = vmatprep.subr.bf16.mxu0 %v2040_v62  ;;  %1936 = vmatmul.mubr.msk.f32.vlgmr.msra.gmra.mrb[20].mxu1 %vm79_vm0, %v2292_v30  ;;  %v2072_v3 = vpack.c.bf16 %v1892_v63, %v401_v1 }
 0x12c   :  { %v264_v2 = vpop.f32.mrb[15].mxu0  ;;  %2043 = vmatpush3.bf16.msra.mxu0 %v2040_v62  ;;  %1949 = vmatprep.mubr.msk.f32.mxu1 %vm79_vm0, %v2286_v22 }
 0x12d   :  { %v2044_v4 = vpack.c.bf16 %v1867_v0, %v264_v2  ;;  %2049 = vmatprep.subr.bf16.mxu0 %v2294_v31  ;;  %v1895_v6 = vpop.f32.mrb[14].mxu1 }
 0x12e   :  { %v411_v7 = vpop.f32.mrb[15].mxu1 }
 0x12f   :  { %2045 = vmatprep.subr.bf16.mxu1 %v2044_v4  ;;  %1943 = vmatmul.mubr.msk.f32.vlgmr.msra.gmra.mrb[22].mxu0 %vm79_vm0, %v2292_v30  ;;  %v2076_v9 = vpack.c.bf16 %v1895_v6, %v411_v7 }
 0x130   :  { %2047 = vmatpush3.bf16.msra.mxu1 %v2044_v4  ;;  %2051 = vmatpush3.bf16.msra.mxu0 %v2294_v31 }
 0x131   :  { %2053 = vmatprep.subr.bf16.mxu1 %v2300_v37  ;;  %1956 = vmatprep.mubr.msk.f32.mxu0 %vm79_vm0, %v422_v5 }
 0x132   :  { %2057 = vmatprep.subr.bf16.mxu0 %v2056_v43 }
 0x133   :  { %1950 = vmatmul.mubr.msk.f32.vlgmr.msra.gmra.mrb[22].mxu1 %vm79_vm0, %v2292_v30  ;;  %1957 = vmatmul.mubr.msk.f32.vlgmr.msra.gmra.mrb[24].mxu0 %vm79_vm0, %v423_v8 }
 0x134   :  { %2055 = vmatpush3.bf16.msra.mxu1 %v2300_v37  ;;  %1963 = vmatprep.mubr.msk.f32.mxu1 %vm79_vm0, %v422_v5 }
 0x135   :  { %2061 = vmatprep.subr.bf16.mxu1 %v2060_v49  ;;  %2059 = vmatpush3.bf16.msra.mxu0 %v2056_v43 }
 0x136   :  { %1970 = vmatprep.mubr.msk.f32.mxu0 %vm79_vm0, %v422_v5  ;;  %2065 = vmatprep.subr.bf16.mxu0 %v2064_v55 }
 0x137   :  { %1964 = vmatmul.mubr.msk.f32.vlgmr.msra.gmra.mrb[24].mxu1 %vm79_vm0, %v423_v8 }
 0x138   :  { %2063 = vmatpush3.bf16.msra.mxu1 %v2060_v49  ;;  %1977 = vmatprep.mubr.msk.f32.mxu1 %vm79_vm0, %v422_v5 }
 0x139   :  { %1971 = vmatmul.mubr.msk.f32.vlgmr.msra.gmra.mrb[26].mxu0 %vm79_vm0, %v423_v8  ;;  %2069 = vmatprep.subr.bf16.mxu1 %v2068_v61 }
 0x13a   :  { %2067 = vmatpush3.bf16.msra.mxu0 %v2064_v55  ;;  %1984 = vmatprep.mubr.msk.f32.mxu0 %vm79_vm0, %v422_v5 }
 0x13b   :  { %1978 = vmatmul.mubr.msk.f32.vlgmr.msra.gmra.mrb[26].mxu1 %vm79_vm0, %v423_v8  ;;  %2073 = vmatprep.subr.bf16.mxu0 %v2072_v3 }
 0x13c   :  { %2071 = vmatpush3.bf16.msra.mxu1 %v2068_v61  ;;  %1991 = vmatprep.mubr.msk.f32.mxu1 %vm79_vm0, %v422_v5 }
 0x13d   :  { %1985 = vmatmul.mubr.msk.f32.vlgmr.msra.gmra.mrb[28].mxu0 %vm79_vm0, %v423_v8  ;;  %2077 = vmatprep.subr.bf16.mxu1 %v2076_v9 }
 0x13e   :  { %2075 = vmatpush3.bf16.msra.mxu0 %v2072_v3  ;;  %1998 = vmatprep.mubr.msk.f32.mxu0 %vm79_vm0, %v422_v5 }
 0x13f   :  { %1992 = vmatmul.mubr.msk.f32.vlgmr.msra.gmra.mrb[28].mxu1 %vm79_vm0, %v423_v8 }
 0x140   :  { %2079 = vmatpush3.bf16.msra.mxu1 %v2076_v9  ;;  %2005 = vmatprep.mubr.msk.f32.mxu1 %vm79_vm0, %v422_v5 }
 0x141   :  { %1999 = vmatmul.mubr.msk.f32.vlgmr.msra.gmra.mrb[30].mxu0 %vm79_vm0, %v423_v8 }
 0x143   :  { %2006 = vmatmul.mubr.msk.f32.vlgmr.msra.gmra.mrb[30].mxu1 %vm79_vm0, %v423_v8 }
 0x1ea   :  { %v1902_v10 = vpop.f32.mrb[16].mxu0 }
 0x1eb   :  { %v496_v11 = vpop.f32.mrb[17].mxu0 }
 0x1ee   :  { %v1909_v12 = vpop.f32.mrb[16].mxu1 }
 0x1ef   :  { %v571_v13 = vpop.f32.mrb[17].mxu1 }
 0x1f2   :  { %v1916_v14 = vpop.f32.mrb[18].mxu0 }
 0x1f3   :  { %v646_v15 = vpop.f32.mrb[19].mxu0 }
 0x1f6   :  { %v1923_v16 = vpop.f32.mrb[18].mxu1 }
 0x1f7   :  { %v721_v17 = vpop.f32.mrb[19].mxu1 }
 0x1fa   :  { %v1930_v18 = vpop.f32.mrb[20].mxu0 }
 0x1fb   :  { %v796_v19 = vpop.f32.mrb[21].mxu0 }
 0x1fe   :  { %v1937_v20 = vpop.f32.mrb[20].mxu1 }
 0x1ff   :  { %v871_v21 = vpop.f32.mrb[21].mxu1 }
 0x202   :  { %v1944_v22 = vpop.f32.mrb[22].mxu0 }
 0x203   :  { %v946_v23 = vpop.f32.mrb[23].mxu0 }
 0x206   :  { %v1951_v24 = vpop.f32.mrb[22].mxu1  ;;  %v1958_v25 = vpop.f32.mrb[24].mxu0 }
 0x207   :  { %v1021_v26 = vpop.f32.mrb[23].mxu1  ;;  %v1637_v27 = vsub.f32 %v1902_v10, %v1958_v25  ;;  %v1102_v28 = vpop.f32.mrb[25].mxu0 }
 0x208   :  { %v1636_v29 = vsub.f32 %v496_v11, %v1102_v28 }
 0x209   :  { %1655 = vst.msk [vmem:[%s2415_s5 + $0x8] sm:$0x1] %vm1654_vm1, %v1637_v27 }
 0x20a   :  { %v1965_v30 = vpop.f32.mrb[24].mxu1  ;;  %1653 = vst.msk [vmem:[%s2415_s5] sm:$0xff] %vm1652_vm2, %v1636_v29 }
 0x20b   :  { %v1639_v31 = vsub.f32 %v1909_v12, %v1965_v30  ;;  %v1177_v32 = vpop.f32.mrb[25].mxu1 }
 0x20c   :  { %v1638_v33 = vsub.f32 %v571_v13, %v1177_v32  ;;  %v1972_v34 = vpop.f32.mrb[26].mxu0 }
 0x20d   :  { %1657 = vst.msk [vmem:[%s2415_s5 + $0x18] sm:$0x1] %vm1654_vm1, %v1639_v31  ;;  %v1641_v35 = vsub.f32 %v1916_v14, %v1972_v34  ;;  %v1252_v36 = vpop.f32.mrb[27].mxu0 }
 0x20e   :  { %1656 = vst.msk [vmem:[%s2415_s5 + $0x10] sm:$0xff] %vm1652_vm2, %v1638_v33  ;;  %v1979_v37 = vpop.f32.mrb[26].mxu1  ;;  %v1640_v38 = vsub.f32 %v646_v15, %v1252_v36 }
 0x20f   :  { %1659 = vst.msk [vmem:[%s2415_s5 + $0x28] sm:$0x1] %vm1654_vm1, %v1641_v35  ;;  %v1643_v39 = vsub.f32 %v1923_v16, %v1979_v37  ;;  %v1327_v40 = vpop.f32.mrb[27].mxu1 }
 0x210   :  { %1658 = vst.msk [vmem:[%s2415_s5 + $0x20] sm:$0xff] %vm1652_vm2, %v1640_v38  ;;  %v1642_v41 = vsub.f32 %v721_v17, %v1327_v40  ;;  %v1986_v42 = vpop.f32.mrb[28].mxu0 }
 0x211   :  { %1661 = vst.msk [vmem:[%s2415_s5 + $0x38] sm:$0x1] %vm1654_vm1, %v1643_v39  ;;  %v1645_v43 = vsub.f32 %v1930_v18, %v1986_v42  ;;  %v1402_v44 = vpop.f32.mrb[29].mxu0 }
 0x212   :  { %1660 = vst.msk [vmem:[%s2415_s5 + $0x30] sm:$0xff] %vm1652_vm2, %v1642_v41  ;;  %v1993_v45 = vpop.f32.mrb[28].mxu1  ;;  %v1644_v46 = vsub.f32 %v796_v19, %v1402_v44 }
 0x213   :  { %1663 = vst.msk [vmem:[%s2415_s5 + $0x48] sm:$0x1] %vm1654_vm1, %v1645_v43  ;;  %v1647_v47 = vsub.f32 %v1937_v20, %v1993_v45  ;;  %v1477_v48 = vpop.f32.mrb[29].mxu1 }
 0x214   :  { %1662 = vst.msk [vmem:[%s2415_s5 + $0x40] sm:$0xff] %vm1652_vm2, %v1644_v46  ;;  %v1646_v49 = vsub.f32 %v871_v21, %v1477_v48  ;;  %v2000_v50 = vpop.f32.mrb[30].mxu0 }
 0x215   :  { %1665 = vst.msk [vmem:[%s2415_s5 + $0x58] sm:$0x1] %vm1654_vm1, %v1647_v47  ;;  %v1649_v51 = vsub.f32 %v1944_v22, %v2000_v50  ;;  %v1552_v52 = vpop.f32.mrb[31].mxu0 }
 0x216   :  { %1664 = vst.msk [vmem:[%s2415_s5 + $0x50] sm:$0xff] %vm1652_vm2, %v1646_v49  ;;  %v2007_v53 = vpop.f32.mrb[30].mxu1  ;;  %v1648_v54 = vsub.f32 %v946_v23, %v1552_v52 }
 0x217   :  { %1667 = vst.msk [vmem:[%s2415_s5 + $0x68] sm:$0x1] %vm1654_vm1, %v1649_v51  ;;  %v1651_v55 = vsub.f32 %v1951_v24, %v2007_v53  ;;  %v1627_v56 = vpop.f32.mrb[31].mxu1 }
 0x218   :  { %1666 = vst.msk [vmem:[%s2415_s5 + $0x60] sm:$0xff] %vm1652_vm2, %v1648_v54  ;;  %v1650_v57 = vsub.f32 %v1021_v26, %v1627_v56 }
 0x219   :  { %1669 = vst.msk [vmem:[%s2415_s5 + $0x78] sm:$0x1] %vm1654_vm1, %v1651_v55 }
 0x21a   :  { %1668 = vst.msk [vmem:[%s2415_s5 + $0x70] sm:$0xff] %vm1652_vm2, %v1650_v57 }
 0x21b   :  { %1674 = vsyncpa [#allocation3], 1 }
 0x21c   :  { %1675 = vsyncpa [#allocation5], 1 }

</bundles_post_ra>
